<compile_context>
chip_gen: v7x
topology: tpu7x:2x2x1
jax: 0.10.0
libtpu: 0.0.40
codegen_flags: <defaults>
</compile_context>

<pallas_src>
import jax
import jax.numpy as jnp
import numpy as np
from jax.experimental import pallas as pl
from jax.experimental.pallas import tpu as pltpu

NUM_STEPS = 2
NUM_INPUTS = 2
NUM_HIDDEN = 4
NUM_OUTPUTS = 3
BETA = 0.9
SLSTM_THRESH = 0.1
LIF_THRESH = 0.4
LANE = 128                      # lane-dense padding width for fc / outputs
GATES = 4 * NUM_HIDDEN          # 16: gates i|f|g|o concatenated along lanes

# Packed parameter slab row layout (single lane-dense (PARAM_ROWS, LANE) f32 operand).
ROW_WIH = 0                              # rows [0, I)   : W_ih as (I, 4H) in lanes [0:16)
ROW_WHH = ROW_WIH + NUM_INPUTS           # rows [2, 6)   : W_hh as (H, 4H) in lanes [0:16)
ROW_B = ROW_WHH + NUM_HIDDEN             # row 6         : fused bias (b_ih + b_hh), lanes [0:16)
ROW_FCB = ROW_B + 1                      # row 7         : fc bias, zero-padded to 128 lanes
ROW_FCW = ROW_FCB + 1                    # rows [8, 12)  : fc weight (H, 128), zero-padded
PARAM_ROWS = 16                          # 12 used rows, padded to 2 full sublanes-of-8

# Padded lanes of mem2/spk2 stay exactly 0 only because fcw/fcb pad lanes are 0 AND
# LIF_THRESH > 0 (so reset never fires in pad lanes). Guard the invariant.
assert LIF_THRESH > 0.0


def _lstm_snn_kernel(x_ref, p_ref, out_ref):
    """Whole 2-step SLSTM -> fc -> Leaky, fully unrolled in one kernel invocation.

    x_ref   : (B, I)                 input (constant over time steps)
    p_ref   : (PARAM_ROWS, LANE)     packed constant parameter slab (see layout above)
    out_ref : (NUM_STEPS*2*B, LANE)  rows = [step, {spk2, mem2}, batch]
    """
    x = x_ref[...]
    P = p_ref[...]                                       # one lane-dense load
    B = x.shape[0]
    H = NUM_HIDDEN

    wih = P[ROW_WIH:ROW_WIH + NUM_INPUTS, :GATES]        # (I, 4H)
    whh = P[ROW_WHH:ROW_WHH + NUM_HIDDEN, :GATES]        # (H, 4H)
    bias = P[ROW_B:ROW_B + 1, :GATES]                    # (1, 4H) fused b_ih + b_hh
    fcb = P[ROW_FCB:ROW_FCB + 1, :]                      # (1, LANE)
    fcw = P[ROW_FCW:ROW_FCW + NUM_HIDDEN, :]             # (H, LANE)

    def fma_matmul(a, w, acc):
        # (B, K) @ (K, N) as K unrolled rank-1 VPU FMAs (K <= 4). No MXU (a push/pop
        # round-trip costs more than the whole contraction at these shapes) and no
        # XLU sublane-sum — keeps the serial mem1 recurrence chain short.
        out = acc
        for k in range(a.shape[1]):
            out = out + a[:, k:k + 1] * w[k:k + 1, :]
        return out

    # Input drive is constant across time steps -> compute once, biases already fused.
    in_drive = fma_matmul(x, wih, jnp.broadcast_to(bias, (B, GATES)))   # (B, 4H)
    # Hoist the fc-bias broadcast out of the unrolled step loop (JAX does not CSE it).
    fcb_b = jnp.broadcast_to(fcb, (B, LANE))

    # init_slstm() / init_leaky() -> zero states
    syn1 = jnp.zeros((B, H), jnp.float32)       # LSTM cell state (c)
    mem1 = jnp.zeros((B, H), jnp.float32)       # LSTM hidden state (h)
    mem2 = jnp.zeros((B, LANE), jnp.float32)    # Leaky membrane (lane-padded; pad stays 0)

    rows = []
    for _ in range(NUM_STEPS):                  # static unroll (NUM_STEPS == 2)
        # ---- SLSTM: single fused contraction for all 4 gates ----
        pre = fma_matmul(mem1, whh, in_drive)               # (B, 4H)
        sig = jax.nn.sigmoid(pre)                           # one EUP pass, all 16 lanes
        i_g = sig[:, 0 * H:1 * H]
        f_g = sig[:, 1 * H:2 * H]
        o_g = sig[:, 3 * H:4 * H]
        g_g = jnp.tanh(pre[:, 2 * H:3 * H])                 # one EUP pass, 4 lanes
        syn1 = f_g * syn1 + i_g * g_g
        mem1 = o_g * jnp.tanh(syn1)
        spk1 = (mem1 > SLSTM_THRESH).astype(jnp.float32)

        # ---- fc (lane-padded to 128; padded lanes of fcw/fcb are exactly 0) ----
        cur2 = fma_matmul(spk1, fcw, fcb_b)                 # (B, LANE)

        # ---- Leaky (reset-by-subtraction); pad lanes stay 0 since LIF_THRESH > 0 ----
        reset = (mem2 > LIF_THRESH).astype(jnp.float32)
        mem2 = BETA * mem2 + cur2 - reset * LIF_THRESH
        spk2 = (mem2 > LIF_THRESH).astype(jnp.float32)

        rows.append(spk2)
        rows.append(mem2)

    # Single unmasked full-slab store: (NUM_STEPS*2*B, LANE) == (8, 128) at B == 2.
    # (Other batch sizes are still correct, just fall back to partial-sublane stores.)
    out_ref[...] = jnp.concatenate(rows, axis=0)


def prepare_params(params):
    """One-time layout plumbing: pack all constants into one lane-dense (16, 128) slab."""
    H, I, O = NUM_HIDDEN, NUM_INPUTS, NUM_OUTPUTS
    w_ih = jnp.asarray(params["w_ih"], jnp.float32)                 # (4H, I), gate order i,f,g,o
    w_hh = jnp.asarray(params["w_hh"], jnp.float32)                 # (4H, H)
    b = (params["b_ih"] + params["b_hh"]).astype(jnp.float32)       # fused bias, (4H,)
    fc_w = jnp.asarray(params["fc_w"], jnp.float32)                 # (O, H)
    fc_b = jnp.asarray(params["fc_b"], jnp.float32)                 # (O,)

    # Transpose so the contraction axis is along sublanes and the 4 gates (i|f|g|o)
    # are concatenated along lanes: x @ (I, 4H), mem1 @ (H, 4H).
    slab = jnp.zeros((PARAM_ROWS, LANE), jnp.float32)
    slab = slab.at[ROW_WIH:ROW_WIH + I, :GATES].set(w_ih.T)
    slab = slab.at[ROW_WHH:ROW_WHH + H, :GATES].set(w_hh.T)
    slab = slab.at[ROW_B, :GATES].set(b)
    slab = slab.at[ROW_FCB, :O].set(fc_b)
    slab = slab.at[ROW_FCW:ROW_FCW + H, :O].set(fc_w.T)
    return slab


@jax.jit
def lstm_net_forward(x, param_slab):
    """x: (B, NUM_INPUTS) f32; returns (spk2_rec, mem2_rec), each (NUM_STEPS, B, O)."""
    B = x.shape[0]
    vmem = pltpu.MemorySpace.VMEM
    out = pl.pallas_call(
        _lstm_snn_kernel,
        out_shape=jax.ShapeDtypeStruct((NUM_STEPS * 2 * B, LANE), jnp.float32),
        in_specs=[pl.BlockSpec(memory_space=vmem)] * 2,
        out_specs=pl.BlockSpec(memory_space=vmem),
    )(x, param_slab)
    out = out.reshape(NUM_STEPS, 2, B, LANE)
    spk_rec = out[:, 0, :, :NUM_OUTPUTS]
    mem_rec = out[:, 1, :, :NUM_OUTPUTS]
    return spk_rec, mem_rec


def lstm_net_reference(x, params):
    """Pure-JAX reference of the same forward pass, for correctness checking."""
    B = x.shape[0]
    H = NUM_HIDDEN
    syn1 = jnp.zeros((B, H), jnp.float32)
    mem1 = jnp.zeros((B, H), jnp.float32)
    mem2 = jnp.zeros((B, NUM_OUTPUTS), jnp.float32)
    spk_rec, mem_rec = [], []
    for _ in range(NUM_STEPS):
        gates = (x @ params["w_ih"].T + params["b_ih"]
                 + mem1 @ params["w_hh"].T + params["b_hh"])
        i_g = jax.nn.sigmoid(gates[:, 0 * H:1 * H])
        f_g = jax.nn.sigmoid(gates[:, 1 * H:2 * H])
        g_g = jnp.tanh(gates[:, 2 * H:3 * H])
        o_g = jax.nn.sigmoid(gates[:, 3 * H:4 * H])
        syn1 = f_g * syn1 + i_g * g_g
        mem1 = o_g * jnp.tanh(syn1)
        spk1 = (mem1 > SLSTM_THRESH).astype(jnp.float32)
        cur2 = spk1 @ params["fc_w"].T + params["fc_b"]
        reset = (mem2 > LIF_THRESH).astype(jnp.float32)
        mem2 = BETA * mem2 + cur2 - reset * LIF_THRESH
        spk2 = (mem2 > LIF_THRESH).astype(jnp.float32)
        spk_rec.append(spk2)
        mem_rec.append(mem2)
    return jnp.stack(spk_rec), jnp.stack(mem_rec)


def init_params(key):
    """Deterministic init matching PyTorch default shapes (U(-1/sqrt(H), 1/sqrt(H)))."""
    k = float(1.0 / np.sqrt(NUM_HIDDEN))
    ks = jax.random.split(key, 6)
    return {
        "w_ih": jax.random.uniform(ks[0], (4 * NUM_HIDDEN, NUM_INPUTS), jnp.float32, -k, k),
        "w_hh": jax.random.uniform(ks[1], (4 * NUM_HIDDEN, NUM_HIDDEN), jnp.float32, -k, k),
        "b_ih": jax.random.uniform(ks[2], (4 * NUM_HIDDEN,), jnp.float32, -k, k),
        "b_hh": jax.random.uniform(ks[3], (4 * NUM_HIDDEN,), jnp.float32, -k, k),
        "fc_w": jax.random.uniform(ks[4], (NUM_OUTPUTS, NUM_HIDDEN), jnp.float32, -k, k),
        "fc_b": jax.random.uniform(ks[5], (NUM_OUTPUTS,), jnp.float32, -k, k),
    }


if __name__ == "__main__":
    key = jax.random.PRNGKey(0)
    k_param, k_x = jax.random.split(key)
    params = init_params(k_param)
    param_slab = prepare_params(params)   # one-time layout plumbing, outside the hot path

    batch = 2
    x = jax.random.normal(k_x, (batch, NUM_INPUTS), jnp.float32)

    spk_rec, mem_rec = lstm_net_forward(x, param_slab)
    jax.block_until_ready(spk_rec)
    jax.block_until_ready(mem_rec)

    spk_ref, mem_ref = lstm_net_reference(x, params)
    np.testing.assert_allclose(np.asarray(mem_rec), np.asarray(mem_ref), atol=1e-4, rtol=1e-4)
    np.testing.assert_allclose(np.asarray(spk_rec), np.asarray(spk_ref), atol=1e-4, rtol=1e-4)

    assert spk_rec.shape == (NUM_STEPS, batch, NUM_OUTPUTS)
    assert mem_rec.shape == (NUM_STEPS, batch, NUM_OUTPUTS)
    print("KERNEL_OK")
</pallas_src>

<mosaic_0001>
module attributes {stable_mosaic.version = 11 : i64} {
  func.func @_lstm_snn_kernel(%arg0: memref<2x2xf32, #tpu.memory_space<vmem>>, %arg1: memref<16x128xf32, #tpu.memory_space<vmem>>, %arg2: memref<8x128xf32, #tpu.memory_space<vmem>>) attributes {dimension_semantics = [], scalar_prefetch = 0 : i64, scratch_operands = 0 : i64, tpu.core_type = #tpu.core_type<tc>} {
    %c0 = arith.constant 0 : index
    %c0_0 = arith.constant 0 : index
    %0 = vector.load %arg0[%c0, %c0_0] : memref<2x2xf32, #tpu.memory_space<vmem>>, vector<2x2xf32>
    %c0_1 = arith.constant 0 : index
    %c0_2 = arith.constant 0 : index
    %1 = vector.load %arg1[%c0_1, %c0_2] : memref<16x128xf32, #tpu.memory_space<vmem>>, vector<16x128xf32>
    %2 = vector.extract_strided_slice %1 {offsets = [0, 0], sizes = [2, 16], strides = [1, 1]} : vector<16x128xf32> to vector<2x16xf32>
    %3 = vector.extract_strided_slice %1 {offsets = [2, 0], sizes = [4, 16], strides = [1, 1]} : vector<16x128xf32> to vector<4x16xf32>
    %4 = vector.extract_strided_slice %1 {offsets = [6, 0], sizes = [1, 16], strides = [1, 1]} : vector<16x128xf32> to vector<1x16xf32>
    %5 = vector.extract_strided_slice %1 {offsets = [7, 0], sizes = [1, 128], strides = [1, 1]} : vector<16x128xf32> to vector<1x128xf32>
    %6 = vector.extract_strided_slice %1 {offsets = [8, 0], sizes = [4, 128], strides = [1, 1]} : vector<16x128xf32> to vector<4x128xf32>
    %7 = vector.shape_cast %4 : vector<1x16xf32> to vector<1x16xf32>
    %8 = vector.broadcast %7 : vector<1x16xf32> to vector<2x16xf32>
    %9 = vector.extract_strided_slice %0 {offsets = [0, 0], sizes = [2, 1], strides = [1, 1]} : vector<2x2xf32> to vector<2x1xf32>
    %10 = vector.extract_strided_slice %2 {offsets = [0, 0], sizes = [1, 16], strides = [1, 1]} : vector<2x16xf32> to vector<1x16xf32>
    %11 = vector.broadcast %9 : vector<2x1xf32> to vector<2x16xf32>
    %12 = vector.broadcast %10 : vector<1x16xf32> to vector<2x16xf32>
    %13 = arith.mulf %11, %12 : vector<2x16xf32>
    %14 = arith.addf %8, %13 : vector<2x16xf32>
    %15 = vector.extract_strided_slice %0 {offsets = [0, 1], sizes = [2, 1], strides = [1, 1]} : vector<2x2xf32> to vector<2x1xf32>
    %16 = vector.extract_strided_slice %2 {offsets = [1, 0], sizes = [1, 16], strides = [1, 1]} : vector<2x16xf32> to vector<1x16xf32>
    %17 = vector.broadcast %15 : vector<2x1xf32> to vector<2x16xf32>
    %18 = vector.broadcast %16 : vector<1x16xf32> to vector<2x16xf32>
    %19 = arith.mulf %17, %18 : vector<2x16xf32>
    %20 = arith.addf %14, %19 : vector<2x16xf32>
    %21 = vector.shape_cast %5 : vector<1x128xf32> to vector<1x128xf32>
    %22 = vector.broadcast %21 : vector<1x128xf32> to vector<2x128xf32>
    %cst = arith.constant 0.000000e+00 : f32
    %23 = vector.broadcast %cst : f32 to vector<2x4xf32>
    %cst_3 = arith.constant 0.000000e+00 : f32
    %24 = vector.broadcast %cst_3 : f32 to vector<2x4xf32>
    %cst_4 = arith.constant 0.000000e+00 : f32
    %25 = vector.broadcast %cst_4 : f32 to vector<2x128xf32>
    %26 = vector.extract_strided_slice %24 {offsets = [0, 0], sizes = [2, 1], strides = [1, 1]} : vector<2x4xf32> to vector<2x1xf32>
    %27 = vector.extract_strided_slice %3 {offsets = [0, 0], sizes = [1, 16], strides = [1, 1]} : vector<4x16xf32> to vector<1x16xf32>
    %28 = vector.broadcast %26 : vector<2x1xf32> to vector<2x16xf32>
    %29 = vector.broadcast %27 : vector<1x16xf32> to vector<2x16xf32>
    %30 = arith.mulf %28, %29 : vector<2x16xf32>
    %31 = arith.addf %20, %30 : vector<2x16xf32>
    %32 = vector.extract_strided_slice %24 {offsets = [0, 1], sizes = [2, 1], strides = [1, 1]} : vector<2x4xf32> to vector<2x1xf32>
    %33 = vector.extract_strided_slice %3 {offsets = [1, 0], sizes = [1, 16], strides = [1, 1]} : vector<4x16xf32> to vector<1x16xf32>
    %34 = vector.broadcast %32 : vector<2x1xf32> to vector<2x16xf32>
    %35 = vector.broadcast %33 : vector<1x16xf32> to vector<2x16xf32>
    %36 = arith.mulf %34, %35 : vector<2x16xf32>
    %37 = arith.addf %31, %36 : vector<2x16xf32>
    %38 = vector.extract_strided_slice %24 {offsets = [0, 2], sizes = [2, 1], strides = [1, 1]} : vector<2x4xf32> to vector<2x1xf32>
    %39 = vector.extract_strided_slice %3 {offsets = [2, 0], sizes = [1, 16], strides = [1, 1]} : vector<4x16xf32> to vector<1x16xf32>
    %40 = vector.broadcast %38 : vector<2x1xf32> to vector<2x16xf32>
    %41 = vector.broadcast %39 : vector<1x16xf32> to vector<2x16xf32>
    %42 = arith.mulf %40, %41 : vector<2x16xf32>
    %43 = arith.addf %37, %42 : vector<2x16xf32>
    %44 = vector.extract_strided_slice %24 {offsets = [0, 3], sizes = [2, 1], strides = [1, 1]} : vector<2x4xf32> to vector<2x1xf32>
    %45 = vector.extract_strided_slice %3 {offsets = [3, 0], sizes = [1, 16], strides = [1, 1]} : vector<4x16xf32> to vector<1x16xf32>
    %46 = vector.broadcast %44 : vector<2x1xf32> to vector<2x16xf32>
    %47 = vector.broadcast %45 : vector<1x16xf32> to vector<2x16xf32>
    %48 = arith.mulf %46, %47 : vector<2x16xf32>
    %49 = arith.addf %43, %48 : vector<2x16xf32>
    %50 = arith.negf %49 : vector<2x16xf32>
    %51 = math.exp %50 : vector<2x16xf32>
    %cst_5 = arith.constant 1.000000e+00 : f32
    %52 = vector.broadcast %cst_5 : f32 to vector<2x16xf32>
    %53 = arith.addf %52, %51 : vector<2x16xf32>
    %54 = arith.divf %52, %53 : vector<2x16xf32>
    %55 = vector.extract_strided_slice %54 {offsets = [0, 0], sizes = [2, 4], strides = [1, 1]} : vector<2x16xf32> to vector<2x4xf32>
    %56 = vector.extract_strided_slice %54 {offsets = [0, 4], sizes = [2, 4], strides = [1, 1]} : vector<2x16xf32> to vector<2x4xf32>
    %57 = vector.extract_strided_slice %54 {offsets = [0, 12], sizes = [2, 4], strides = [1, 1]} : vector<2x16xf32> to vector<2x4xf32>
    %58 = vector.extract_strided_slice %49 {offsets = [0, 8], sizes = [2, 4], strides = [1, 1]} : vector<2x16xf32> to vector<2x4xf32>
    %59 = math.tanh %58 : vector<2x4xf32>
    %60 = arith.mulf %56, %23 : vector<2x4xf32>
    %61 = arith.mulf %55, %59 : vector<2x4xf32>
    %62 = arith.addf %60, %61 : vector<2x4xf32>
    %63 = math.tanh %62 : vector<2x4xf32>
    %64 = arith.mulf %57, %63 : vector<2x4xf32>
    %cst_6 = arith.constant 1.000000e-01 : f32
    %65 = vector.broadcast %cst_6 : f32 to vector<2x4xf32>
    %66 = arith.cmpf ogt, %64, %65 : vector<2x4xf32>
    %67 = arith.extui %66 : vector<2x4xi1> to vector<2x4xi32>
    %68 = arith.sitofp %67 : vector<2x4xi32> to vector<2x4xf32>
    %69 = vector.extract_strided_slice %68 {offsets = [0, 0], sizes = [2, 1], strides = [1, 1]} : vector<2x4xf32> to vector<2x1xf32>
    %70 = vector.extract_strided_slice %6 {offsets = [0, 0], sizes = [1, 128], strides = [1, 1]} : vector<4x128xf32> to vector<1x128xf32>
    %71 = vector.broadcast %69 : vector<2x1xf32> to vector<2x128xf32>
    %72 = vector.broadcast %70 : vector<1x128xf32> to vector<2x128xf32>
    %73 = arith.mulf %71, %72 : vector<2x128xf32>
    %74 = arith.addf %22, %73 : vector<2x128xf32>
    %75 = vector.extract_strided_slice %68 {offsets = [0, 1], sizes = [2, 1], strides = [1, 1]} : vector<2x4xf32> to vector<2x1xf32>
    %76 = vector.extract_strided_slice %6 {offsets = [1, 0], sizes = [1, 128], strides = [1, 1]} : vector<4x128xf32> to vector<1x128xf32>
    %77 = vector.broadcast %75 : vector<2x1xf32> to vector<2x128xf32>
    %78 = vector.broadcast %76 : vector<1x128xf32> to vector<2x128xf32>
    %79 = arith.mulf %77, %78 : vector<2x128xf32>
    %80 = arith.addf %74, %79 : vector<2x128xf32>
    %81 = vector.extract_strided_slice %68 {offsets = [0, 2], sizes = [2, 1], strides = [1, 1]} : vector<2x4xf32> to vector<2x1xf32>
    %82 = vector.extract_strided_slice %6 {offsets = [2, 0], sizes = [1, 128], strides = [1, 1]} : vector<4x128xf32> to vector<1x128xf32>
    %83 = vector.broadcast %81 : vector<2x1xf32> to vector<2x128xf32>
    %84 = vector.broadcast %82 : vector<1x128xf32> to vector<2x128xf32>
    %85 = arith.mulf %83, %84 : vector<2x128xf32>
    %86 = arith.addf %80, %85 : vector<2x128xf32>
    %87 = vector.extract_strided_slice %68 {offsets = [0, 3], sizes = [2, 1], strides = [1, 1]} : vector<2x4xf32> to vector<2x1xf32>
    %88 = vector.extract_strided_slice %6 {offsets = [3, 0], sizes = [1, 128], strides = [1, 1]} : vector<4x128xf32> to vector<1x128xf32>
    %89 = vector.broadcast %87 : vector<2x1xf32> to vector<2x128xf32>
    %90 = vector.broadcast %88 : vector<1x128xf32> to vector<2x128xf32>
    %91 = arith.mulf %89, %90 : vector<2x128xf32>
    %92 = arith.addf %86, %91 : vector<2x128xf32>
    %cst_7 = arith.constant 4.000000e-01 : f32
    %93 = vector.broadcast %cst_7 : f32 to vector<2x128xf32>
    %94 = arith.cmpf ogt, %25, %93 : vector<2x128xf32>
    %95 = arith.extui %94 : vector<2x128xi1> to vector<2x128xi32>
    %96 = arith.sitofp %95 : vector<2x128xi32> to vector<2x128xf32>
    %cst_8 = arith.constant 0.899999976 : f32
    %97 = vector.broadcast %cst_8 : f32 to vector<2x128xf32>
    %98 = arith.mulf %97, %25 : vector<2x128xf32>
    %99 = arith.addf %98, %92 : vector<2x128xf32>
    %cst_9 = arith.constant 4.000000e-01 : f32
    %100 = vector.broadcast %cst_9 : f32 to vector<2x128xf32>
    %101 = arith.mulf %96, %100 : vector<2x128xf32>
    %102 = arith.subf %99, %101 : vector<2x128xf32>
    %cst_10 = arith.constant 4.000000e-01 : f32
    %103 = vector.broadcast %cst_10 : f32 to vector<2x128xf32>
    %104 = arith.cmpf ogt, %102, %103 : vector<2x128xf32>
    %105 = arith.extui %104 : vector<2x128xi1> to vector<2x128xi32>
    %106 = arith.sitofp %105 : vector<2x128xi32> to vector<2x128xf32>
    %107 = vector.extract_strided_slice %64 {offsets = [0, 0], sizes = [2, 1], strides = [1, 1]} : vector<2x4xf32> to vector<2x1xf32>
    %108 = vector.extract_strided_slice %3 {offsets = [0, 0], sizes = [1, 16], strides = [1, 1]} : vector<4x16xf32> to vector<1x16xf32>
    %109 = vector.broadcast %107 : vector<2x1xf32> to vector<2x16xf32>
    %110 = vector.broadcast %108 : vector<1x16xf32> to vector<2x16xf32>
    %111 = arith.mulf %109, %110 : vector<2x16xf32>
    %112 = arith.addf %20, %111 : vector<2x16xf32>
    %113 = vector.extract_strided_slice %64 {offsets = [0, 1], sizes = [2, 1], strides = [1, 1]} : vector<2x4xf32> to vector<2x1xf32>
    %114 = vector.extract_strided_slice %3 {offsets = [1, 0], sizes = [1, 16], strides = [1, 1]} : vector<4x16xf32> to vector<1x16xf32>
    %115 = vector.broadcast %113 : vector<2x1xf32> to vector<2x16xf32>
    %116 = vector.broadcast %114 : vector<1x16xf32> to vector<2x16xf32>
    %117 = arith.mulf %115, %116 : vector<2x16xf32>
    %118 = arith.addf %112, %117 : vector<2x16xf32>
    %119 = vector.extract_strided_slice %64 {offsets = [0, 2], sizes = [2, 1], strides = [1, 1]} : vector<2x4xf32> to vector<2x1xf32>
    %120 = vector.extract_strided_slice %3 {offsets = [2, 0], sizes = [1, 16], strides = [1, 1]} : vector<4x16xf32> to vector<1x16xf32>
    %121 = vector.broadcast %119 : vector<2x1xf32> to vector<2x16xf32>
    %122 = vector.broadcast %120 : vector<1x16xf32> to vector<2x16xf32>
    %123 = arith.mulf %121, %122 : vector<2x16xf32>
    %124 = arith.addf %118, %123 : vector<2x16xf32>
    %125 = vector.extract_strided_slice %64 {offsets = [0, 3], sizes = [2, 1], strides = [1, 1]} : vector<2x4xf32> to vector<2x1xf32>
    %126 = vector.extract_strided_slice %3 {offsets = [3, 0], sizes = [1, 16], strides = [1, 1]} : vector<4x16xf32> to vector<1x16xf32>
    %127 = vector.broadcast %125 : vector<2x1xf32> to vector<2x16xf32>
    %128 = vector.broadcast %126 : vector<1x16xf32> to vector<2x16xf32>
    %129 = arith.mulf %127, %128 : vector<2x16xf32>
    %130 = arith.addf %124, %129 : vector<2x16xf32>
    %131 = arith.negf %130 : vector<2x16xf32>
    %132 = math.exp %131 : vector<2x16xf32>
    %cst_11 = arith.constant 1.000000e+00 : f32
    %133 = vector.broadcast %cst_11 : f32 to vector<2x16xf32>
    %134 = arith.addf %133, %132 : vector<2x16xf32>
    %135 = arith.divf %133, %134 : vector<2x16xf32>
    %136 = vector.extract_strided_slice %135 {offsets = [0, 0], sizes = [2, 4], strides = [1, 1]} : vector<2x16xf32> to vector<2x4xf32>
    %137 = vector.extract_strided_slice %135 {offsets = [0, 4], sizes = [2, 4], strides = [1, 1]} : vector<2x16xf32> to vector<2x4xf32>
    %138 = vector.extract_strided_slice %135 {offsets = [0, 12], sizes = [2, 4], strides = [1, 1]} : vector<2x16xf32> to vector<2x4xf32>
    %139 = vector.extract_strided_slice %130 {offsets = [0, 8], sizes = [2, 4], strides = [1, 1]} : vector<2x16xf32> to vector<2x4xf32>
    %140 = math.tanh %139 : vector<2x4xf32>
    %141 = arith.mulf %137, %62 : vector<2x4xf32>
    %142 = arith.mulf %136, %140 : vector<2x4xf32>
    %143 = arith.addf %141, %142 : vector<2x4xf32>
    %144 = math.tanh %143 : vector<2x4xf32>
    %145 = arith.mulf %138, %144 : vector<2x4xf32>
    %cst_12 = arith.constant 1.000000e-01 : f32
    %146 = vector.broadcast %cst_12 : f32 to vector<2x4xf32>
    %147 = arith.cmpf ogt, %145, %146 : vector<2x4xf32>
    %148 = arith.extui %147 : vector<2x4xi1> to vector<2x4xi32>
    %149 = arith.sitofp %148 : vector<2x4xi32> to vector<2x4xf32>
    %150 = vector.extract_strided_slice %149 {offsets = [0, 0], sizes = [2, 1], strides = [1, 1]} : vector<2x4xf32> to vector<2x1xf32>
    %151 = vector.extract_strided_slice %6 {offsets = [0, 0], sizes = [1, 128], strides = [1, 1]} : vector<4x128xf32> to vector<1x128xf32>
    %152 = vector.broadcast %150 : vector<2x1xf32> to vector<2x128xf32>
    %153 = vector.broadcast %151 : vector<1x128xf32> to vector<2x128xf32>
    %154 = arith.mulf %152, %153 : vector<2x128xf32>
    %155 = arith.addf %22, %154 : vector<2x128xf32>
    %156 = vector.extract_strided_slice %149 {offsets = [0, 1], sizes = [2, 1], strides = [1, 1]} : vector<2x4xf32> to vector<2x1xf32>
    %157 = vector.extract_strided_slice %6 {offsets = [1, 0], sizes = [1, 128], strides = [1, 1]} : vector<4x128xf32> to vector<1x128xf32>
    %158 = vector.broadcast %156 : vector<2x1xf32> to vector<2x128xf32>
    %159 = vector.broadcast %157 : vector<1x128xf32> to vector<2x128xf32>
    %160 = arith.mulf %158, %159 : vector<2x128xf32>
    %161 = arith.addf %155, %160 : vector<2x128xf32>
    %162 = vector.extract_strided_slice %149 {offsets = [0, 2], sizes = [2, 1], strides = [1, 1]} : vector<2x4xf32> to vector<2x1xf32>
    %163 = vector.extract_strided_slice %6 {offsets = [2, 0], sizes = [1, 128], strides = [1, 1]} : vector<4x128xf32> to vector<1x128xf32>
    %164 = vector.broadcast %162 : vector<2x1xf32> to vector<2x128xf32>
    %165 = vector.broadcast %163 : vector<1x128xf32> to vector<2x128xf32>
    %166 = arith.mulf %164, %165 : vector<2x128xf32>
    %167 = arith.addf %161, %166 : vector<2x128xf32>
    %168 = vector.extract_strided_slice %149 {offsets = [0, 3], sizes = [2, 1], strides = [1, 1]} : vector<2x4xf32> to vector<2x1xf32>
    %169 = vector.extract_strided_slice %6 {offsets = [3, 0], sizes = [1, 128], strides = [1, 1]} : vector<4x128xf32> to vector<1x128xf32>
    %170 = vector.broadcast %168 : vector<2x1xf32> to vector<2x128xf32>
    %171 = vector.broadcast %169 : vector<1x128xf32> to vector<2x128xf32>
    %172 = arith.mulf %170, %171 : vector<2x128xf32>
    %173 = arith.addf %167, %172 : vector<2x128xf32>
    %cst_13 = arith.constant 4.000000e-01 : f32
    %174 = vector.broadcast %cst_13 : f32 to vector<2x128xf32>
    %175 = arith.cmpf ogt, %102, %174 : vector<2x128xf32>
    %176 = arith.extui %175 : vector<2x128xi1> to vector<2x128xi32>
    %177 = arith.sitofp %176 : vector<2x128xi32> to vector<2x128xf32>
    %cst_14 = arith.constant 0.899999976 : f32
    %178 = vector.broadcast %cst_14 : f32 to vector<2x128xf32>
    %179 = arith.mulf %178, %102 : vector<2x128xf32>
    %180 = arith.addf %179, %173 : vector<2x128xf32>
    %cst_15 = arith.constant 4.000000e-01 : f32
    %181 = vector.broadcast %cst_15 : f32 to vector<2x128xf32>
    %182 = arith.mulf %177, %181 : vector<2x128xf32>
    %183 = arith.subf %180, %182 : vector<2x128xf32>
    %cst_16 = arith.constant 4.000000e-01 : f32
    %184 = vector.broadcast %cst_16 : f32 to vector<2x128xf32>
    %185 = arith.cmpf ogt, %183, %184 : vector<2x128xf32>
    %186 = arith.extui %185 : vector<2x128xi1> to vector<2x128xi32>
    %187 = arith.sitofp %186 : vector<2x128xi32> to vector<2x128xf32>
    %188 = tpu.concatenate %106, %102, %187, %183 in 0 : vector<2x128xf32>, vector<2x128xf32>, vector<2x128xf32>, vector<2x128xf32> -> vector<8x128xf32>
    %c0_17 = arith.constant 0 : index
    %c0_18 = arith.constant 0 : index
    %189 = vector.load %arg2[%c0_17, %c0_18] : memref<8x128xf32, #tpu.memory_space<vmem>>, vector<8x128xf32>
    tpu.vector_store %arg2[%c0_17, %c0_18], %188 {strides = array<i32>} : memref<8x128xf32, #tpu.memory_space<vmem>>, vector<8x128xf32>,
    return
  }
}

</mosaic_0001>

<bundles_post_ra>
// kernel: lstm_net_forward.1
= control target key start
LH: loop header
LB: loop body
LE: loop exit
PB: predicated region body
PF: predicated region fallthrough
CT: control target
= control target key end

     0   :  { %7 = vsyncpa [#allocation3], 0  ;;  %s495_s0 = inlined_call_operand.hbm [shape: f32[2,2], index: 0, kind: input, shape index: {}]   ;;  %s496_s1 = inlined_call_operand.hbm [shape: f32[16,128], index: 1, kind: input, shape index: {}]   ;;  %s497_s2 = inlined_call_operand.vmem [shape: f32[8,128], index: 2, kind: output, shape index: {}]  }
   0x1   :  { %8 = vsyncpa [#allocation5], 0  ;;  %s390_s9 = smov [#allocation2]   ;;  %s391_s11 = smov [#allocation4]  }
   0x2   :  { %s15_s10 = sshll.u32 %s390_s9, 4  ;;  %s24_s12 = sshll.u32 %s391_s11, 4  ;;  %s16_s10 = int_to_ptr.vmem [resolvable:$true] %s15_s10  ;;  %s418_s12 = int_to_ptr.vmem [resolvable:$true] %s24_s12 }
   0x3   :  { %s342_s15 = scalar_lea.hbm %s495_s0, 32 }
   0x4   :  { %p343_p0 = scmp.ne.s32.totalorder %s495_s0, %s342_s15  ;;  %p346_p1 = scmp.lt.u32.totalorder %s342_s15, %s495_s0 }
   0x6   :  { %p348_p2 = pnand %p346_p1, %p343_p0 }
   0x8   :  { %351 = shalt.err (!%p348_p2)
}
   0x9   :  { %s352_s20 = scalar_lea.vmem %s16_s10, 32  ;;  %p357_p4 = scmp.lt.s32.totalorder %s16_s10, %s16_s10 }
   0xa   :  { %p353_p3 = scmp.ne.s32.totalorder %s16_s10, %s352_s20  ;;  %p358_p5 = scmp.lt.s32.totalorder %s352_s20, %s352_s20 }
   0xc   :  { %p359_p6 = por %p358_p5, %p357_p4 }
   0xe   :  { %p360_p7 = pnand %p359_p6, %p353_p3 }
  0x10   :  { %363 = shalt.err (!%p360_p7)
}
  0x11   :  { %18 = dma.hbm_to_vmem [thread:$0]  %s495_s0, 32, %s16_s10, [#allocation3]  }
  0x12   :  { %s364_s25 = scalar_lea.hbm %s496_s1, 256 }
  0x13   :  { %p365_p8 = scmp.ne.s32.totalorder %s496_s1, %s364_s25  ;;  %p368_p9 = scmp.lt.u32.totalorder %s364_s25, %s496_s1 }
  0x15   :  { %p370_p10 = pnand %p368_p9, %p365_p8 }
  0x17   :  { %373 = shalt.err (!%p370_p10)
}
  0x18   :  { %s374_s30 = scalar_lea.vmem %s418_s12, 256  ;;  %p379_p12 = scmp.lt.s32.totalorder %s418_s12, %s418_s12 }
  0x19   :  { %p375_p11 = scmp.ne.s32.totalorder %s418_s12, %s374_s30  ;;  %p380_p13 = scmp.lt.s32.totalorder %s374_s30, %s374_s30 }
  0x1b   :  { %p381_p0 = por %p380_p13, %p379_p12 }
  0x1d   :  { %p382_p1 = pnand %p381_p0, %p375_p11 }
  0x1f   :  { %385 = shalt.err (!%p382_p1)
}
  0x20   :  { %s392_s0 = smov 128   ;;  %s393_s3 = smov 8  }
  0x21   :  { %30 = dma.hbm_to_vmem [thread:$0]  %s496_s1, 256, %s418_s12, [#allocation5], %s392_s0, %s392_s0, %s393_s3  }
  0x22   :  { %386 = dma.done.wait [#allocation3], 32  }
  0x23   :  { %387 = vsyncadd [#allocation3], 4294967264 }
  0x24   :  { %388 = dma.done.wait [#allocation5], 256  }
  0x25   :  { %389 = vsyncadd [#allocation5], 4294967040  ;;  %v394_v0 = vmov 0   ;;  %v37_v1 = vld [vmem:[#allocation2] sm:$0x3]  ;;  %v395_v2 = vmov 1   ;;  %v40_v3 = vlaneseq }
  0x26   :  { %295 = vset.pattern.permute.xlu0 %v394_v0  ;;  %v453_v6 = vld [vmem:[#allocation4] sm:$0xff]  ;;  %s396_s1 = smov 120   ;;  %s397_s6 = smov 4   ;;  %v398_v44 = vmov 13   ;;  %v399_v45 = vmov 12   ;;  %v400_v49 = vmov 14  }
  0x27   :  { %46 = vperm.xlu0 %295, %v37_v1   ;;  %v450_v4 = vshrl.u32 %v40_v3, 7  ;;  %298 = vset.pattern.permute.xlu1 %v398_v44  ;;  %v401_v50 = vmov 15   ;;  %vm263_vm3 = vcmask 1041408   ;;  %vm265_vm5 = vcmask 1043456  }
  0x28   :  { %vm267_vm6 = vcmask 1045504  }
  0x29   :  { %v51_v5 = vsub.s32 0, %v450_v4  ;;  %v42_v7 = vsub.s32 6, %v450_v4  ;;  %v61_v9 = vsub.s32 1, %v450_v4  ;;  %v71_v10 = vsub.s32 2, %v450_v4 }
  0x2a   :  { %v77_v12 = vsub.s32 3, %v450_v4  ;;  %v83_v17 = vsub.s32 4, %v450_v4  ;;  %v89_v19 = vsub.s32 5, %v450_v4 }
  0x2b   :  { %296 = vset.pattern.permute.xlu0 %v395_v2  ;;  %v52_v8 = vrot.slane %v453_v6, %v51_v5  ;;  %v43_v13 = vrot.slane %v453_v6, %v42_v7  ;;  %v62_v15 = vrot.slane %v453_v6, %v61_v9  ;;  %v72_v16 = vrot.slane %v453_v6, %v71_v10 }
  0x2c   :  { %56 = vperm.xlu0 %296, %v37_v1   ;;  %v78_v18 = vrot.slane %v453_v6, %v77_v12  ;;  %v84_v23 = vrot.slane %v453_v6, %v83_v17  ;;  %v90_v26 = vrot.slane %v453_v6, %v89_v19 }
  0x2d   :  { %v73_v22 = vmul.f32 0.0, %v72_v16 }
  0x2e   :  { %v79_v25 = vmul.f32 0.0, %v78_v18  ;;  %v85_v28 = vmul.f32 0.0, %v84_v23  ;;  %v91_v30 = vmul.f32 0.0, %v90_v26 }
  0x30   :  { %297 = vset.pattern.permute.xlu0 %v399_v45 }
  0xa6   :  { %v47_v11 = vpop.permute.xlu0 %46 }
  0xa7   :  { %v53_v14 = vmul.f32 %v52_v8, %v47_v11 }
  0xa9   :  { %v54_v21 = vadd.f32 %v53_v14, %v43_v13 }
  0xab   :  { %v57_v20 = vpop.permute.xlu0 %56 }
  0xac   :  { %v63_v24 = vmul.f32 %v62_v15, %v57_v20 }
  0xae   :  { %v64_v27 = vadd.f32 %v63_v24, %v54_v21 }
  0xb0   :  { %v74_v29 = vadd.f32 %v73_v22, %v64_v27  ;;  %v39_v22 = vld [vmem:[#allocation4 + $0x8] sm:$0xff] }
  0xb1   :  { %v128_v24 = vrot.slane %v39_v22, %v51_v5 }
  0xb2   :  { %v80_v31 = vadd.f32 %v79_v25, %v74_v29 }
  0xb4   :  { %v86_v32 = vadd.f32 %v85_v28, %v80_v31 }
  0xb6   :  { %v92_v33 = vadd.f32 %v91_v30, %v86_v32  ;;  %v138_v30 = vrot.slane %v39_v22, %v61_v9 }
  0xb8   :  { %326 = vtanh.f32 %v92_v33  ;;  %v276_v35 = vmul.f32 -1.442695, %v92_v33 }
  0xba   :  { %328 = vpow2.f32 %v276_v35 }
  0xc2   :  { %v327_v34 = vpop.eup %326 }
  0xc3   :  { %102 = vrot.lane.b32.xlu1 %v327_v34, %s396_s1 }
  0xc4   :  { %v329_v36 = vpop.eup %328 }
  0xc5   :  { %v96_v37 = vadd.f32 1.0, %v329_v36  ;;  %v148_v36 = vrot.slane %v39_v22, %v71_v10 }
  0xc7   :  { %330 = vrcp.f32 %v96_v37 }
  0xd1   :  { %v331_v38 = vpop.eup %330 }
  0xd2   :  { %v100_v41 = vmul.f32 0.0, %v331_v38 }
 0x135   :  { %v103_v39 = vpop.permute.xlu1 %102 }
 0x136   :  { %v105_v40 = vmul.f32 %v331_v38, %v103_v39 }
 0x138   :  { %107 = vrot.lane.b32.xlu1 %v105_v40, %s397_s6 }
 0x1aa   :  { %v108_v42 = vpop.permute.xlu1 %107 }
 0x1ab   :  { %v110_v43 = vadd.f32 %v108_v42, %v100_v41 }
 0x1ad   :  { %332 = vtanh.f32 %v110_v43 }
 0x1b7   :  { %v333_v46 = vpop.eup %332 }
 0x1b8   :  { %113 = vrot.lane.b32.xlu1 %v333_v46, %s393_s3 }
 0x22a   :  { %v114_v47 = vpop.permute.xlu1 %113 }
 0x22b   :  { %v116_v48 = vmul.f32 %v331_v38, %v114_v47 }
 0x22d   :  { %178 = vperm.xlu1 %298, %v116_v48   ;;  %172 = vperm.xlu0 %297, %v116_v48   ;;  %vm117_vm0 = vcmp.gt.f32.partialorder %v116_v48, 0.1 }
 0x231   :  { %299 = vset.pattern.permute.xlu1 %v400_v49  ;;  %300 = vset.pattern.permute.xlu0 %v401_v50 }
 0x232   :  { %184 = vperm.xlu1 %299, %v116_v48   ;;  %190 = vperm.xlu0 %300, %v116_v48  }
 0x236   :  { %301 = vset.pattern.permute.xlu1 %v399_v45  ;;  %307 = vset.pattern.permute.xlu0 %v398_v44 }
 0x2ac   :  { %v179_v51 = vpop.permute.xlu1 %178  ;;  %v173_v52 = vpop.permute.xlu0 %172 }
 0x2ad   :  { %v175_v53 = vmul.f32 %v173_v52, %v72_v16  ;;  %v181_v54 = vmul.f32 %v179_v51, %v78_v18  ;;  %v402_v18 = vmov 0.0  }
 0x2ae   :  { %v277_v20 = vsel %vm117_vm0, 1.0, %v402_v18 }
 0x2af   :  { %v176_v55 = vadd.f32 %v175_v53, %v64_v27 }
 0x2b1   :  { %v185_v56 = vpop.permute.xlu1 %184  ;;  %v182_v57 = vadd.f32 %v181_v54, %v176_v55  ;;  %v191_v58 = vpop.permute.xlu0 %190 }
 0x2b2   :  { %v187_v59 = vmul.f32 %v185_v56, %v84_v23  ;;  %v193_v61 = vmul.f32 %v191_v58, %v90_v26  ;;  %v67_v23 = vsub.s32 7, %v450_v4 }
 0x2b4   :  { %v188_v60 = vadd.f32 %v187_v59, %v182_v57  ;;  %v68_v27 = vrot.slane %v453_v6, %v67_v23 }
 0x2b6   :  { %v194_v62 = vadd.f32 %v193_v61, %v188_v60 }
 0x2b8   :  { %334 = vtanh.f32 %v194_v62  ;;  %v279_v0 = vmul.f32 -1.442695, %v194_v62 }
 0x2ba   :  { %336 = vpow2.f32 %v279_v0 }
 0x2c2   :  { %v335_v63 = vpop.eup %334 }
 0x2c3   :  { %204 = vrot.lane.b32.xlu1 %v335_v63, %s396_s1 }
 0x2c4   :  { %v337_v1 = vpop.eup %336 }
 0x2c5   :  { %v198_v2 = vadd.f32 1.0, %v337_v1 }
 0x2c7   :  { %338 = vrcp.f32 %v198_v2 }
 0x2d1   :  { %v339_v3 = vpop.eup %338 }
 0x2d2   :  { %v202_v11 = vmul.f32 %v339_v3, %v110_v43  ;;  %v158_v43 = vrot.slane %v39_v22, %v77_v12 }
 0x335   :  { %v205_v7 = vpop.permute.xlu1 %204 }
 0x336   :  { %v207_v8 = vmul.f32 %v339_v3, %v205_v7 }
 0x338   :  { %209 = vrot.lane.b32.xlu1 %v207_v8, %s397_s6 }
 0x3aa   :  { %v210_v13 = vpop.permute.xlu1 %209 }
 0x3ab   :  { %v212_v14 = vadd.f32 %v210_v13, %v202_v11 }
 0x3ad   :  { %340 = vtanh.f32 %v212_v14 }
 0x3b7   :  { %v341_v15 = vpop.eup %340 }
 0x3b8   :  { %215 = vrot.lane.b32.xlu0 %v341_v15, %s393_s3 }
 0x42a   :  { %v216_v16 = vpop.permute.xlu0 %215 }
 0x42b   :  { %v218_v17 = vmul.f32 %v339_v3, %v216_v16 }
 0x42d   :  { %vm219_vm1 = vcmp.gt.f32.partialorder %v218_v17, 0.1 }
 0x42e   :  { %v280_v19 = vsel %vm219_vm1, 1.0, %v402_v18 }
 0x42f   :  { %v308_v21 = vpack.i.bf16 %v280_v19, %v277_v20 }
 0x431   :  { %309 = vperm.xlu0 %307, %v308_v21   ;;  %303 = vperm.xlu1 %301, %v308_v21  }
 0x435   :  { %313 = vset.pattern.permute.xlu1 %v400_v49  ;;  %325 = vset.pattern.permute.xlu0 %v401_v50 }
 0x436   :  { %315 = vperm.xlu1 %313, %v308_v21  }
 0x43a   :  { %319 = vset.pattern.permute.xlu1 %v401_v50 }
 0x43b   :  { %321 = vperm.xlu1 %319, %v308_v21  }
 0x4b0   :  { %v310_v25 = vpop.permute.xlu0 %309  ;;  %v304_v26 = vpop.permute.xlu1 %303 }
 0x4b1   :  { %v306_v28 = vunpack.i.h.bf16 %v304_v26  ;;  %v305_v29 = vunpack.i.l.bf16 %v304_v26  ;;  %v311_v31 = vunpack.i.l.bf16 %v310_v25  ;;  %v312_v34 = vunpack.i.h.bf16 %v310_v25 }
 0x4b3   :  { %v227_v32 = vmul.f32 %v306_v28, %v128_v24  ;;  %v129_v33 = vmul.f32 %v305_v29, %v128_v24  ;;  %v139_v5 = vmul.f32 %v311_v31, %v138_v30  ;;  %v233_v41 = vmul.f32 %v312_v34, %v138_v30 }
 0x4b5   :  { %v130_v35 = vadd.f32 %v129_v33, %v68_v27  ;;  %v316_v37 = vpop.permute.xlu1 %315  ;;  %v228_v39 = vadd.f32 %v227_v32, %v68_v27 }
 0x4b6   :  { %v317_v38 = vunpack.i.l.bf16 %v316_v37  ;;  %v318_v40 = vunpack.i.h.bf16 %v316_v37 }
 0x4b7   :  { %v140_v6 = vadd.f32 %v139_v5, %v130_v35  ;;  %v234_v45 = vadd.f32 %v233_v41, %v228_v39 }
 0x4b8   :  { %v149_v42 = vmul.f32 %v317_v38, %v148_v36  ;;  %v239_v44 = vmul.f32 %v318_v40, %v148_v36 }
 0x4ba   :  { %v322_v9 = vpop.permute.xlu1 %321  ;;  %v150_v48 = vadd.f32 %v149_v42, %v140_v6  ;;  %v240_v10 = vadd.f32 %v239_v44, %v234_v45 }
 0x4bb   :  { %v324_v46 = vunpack.i.h.bf16 %v322_v9  ;;  %v323_v47 = vunpack.i.l.bf16 %v322_v9 }
 0x4bd   :  { %v245_v49 = vmul.f32 %v324_v46, %v158_v43  ;;  %v159_v50 = vmul.f32 %v323_v47, %v158_v43 }
 0x4bf   :  { %v160_v51 = vadd.f32 %v159_v50, %v150_v48  ;;  %v246_v52 = vadd.f32 %v245_v49, %v240_v10 }
 0x4c1   :  { %vm167_vm2 = vcmp.gt.f32.partialorder %v160_v51, 0.4  ;;  %v247_v53 = vmul.f32 0.9, %v160_v51  ;;  %v255_v58 = vrot.slane %v160_v51, 6 }
 0x4c2   :  { %v278_v54 = vsel %vm167_vm2, 1.0, %v402_v18 }
 0x4c3   :  { %v248_v55 = vadd.f32 %v247_v53, %v246_v52  ;;  %v249_v56 = vmul.f32 0.4, %v278_v54  ;;  %v264_v60 = vsel %vm263_vm3, %v278_v54, %v255_v58 }
 0x4c5   :  { %v250_v57 = vsub.f32 %v248_v55, %v249_v56 }
 0x4c7   :  { %vm251_vm4 = vcmp.gt.f32.partialorder %v250_v57, 0.4  ;;  %v261_v59 = vrot.slane %v250_v57, 2 }
 0x4c8   :  { %v281_v4 = vsel %vm251_vm4, 1.0, %v402_v18 }
 0x4c9   :  { %v258_v12 = vrot.slane %v281_v4, 4 }
 0x4cb   :  { %v266_v61 = vsel %vm265_vm5, %v264_v60, %v258_v12 }
 0x4cc   :  { %v268_v62 = vsel %vm267_vm6, %v266_v61, %v261_v59 }
 0x4cd   :  { %269 = vst [vmem:[%s497_s2] sm:$0xff] %v268_v62 }
 0x4ce   :  { %274 = vsyncpa [#allocation3], 1 }
 0x4cf   :  { %275 = vsyncpa [#allocation5], 1 }

</bundles_post_ra>
